<compile_context>
chip_gen: v6e
topology: v6e:2x2x1
jax: 0.10.0
libtpu: 0.0.40
codegen_flags: <defaults>
</compile_context>

<pallas_src>
import functools

import jax
import jax.numpy as jnp
from jax import lax
from jax.experimental import pallas as pl
from jax.experimental.pallas import tpu as pltpu

_EPS = 1e-5                  # torch F.layer_norm default
_TM_TARGET = 256             # max rows per tile


def _row_tile(rows: int) -> int:
    """Row-tile size: <= _TM_TARGET, multiple of 8, and >= 2 tiles when
    possible so v7x's two TensorCores both get work."""
    if rows <= 8:
        return rows
    tm = min(_TM_TARGET, -(-((rows + 1) // 2) // 8) * 8)
    return min(tm, rows)


def _vmem_limit(block_bytes: int) -> int:
    """Honest scoped-VMEM request: double-buffered blocks + compiler margin."""
    need = 2 * block_bytes + (4 << 20)
    return int(min(max(need, 16 << 20), 64 << 20))


# --------------------------------------------------------------------------
# Kernel 1: fused LayerNorm + matmul (+ optional bias):  out = LN(x) @ W (+ b)
#   1-D grid over row tiles; weight panel has a constant index_map and stays
#   VMEM-resident.  LN in f32, matmul inputs cast to the (bf16) weight dtype.
# --------------------------------------------------------------------------
def _make_ln_matmul_kernel(has_bias):
    def kernel(x_ref, g_ref, beta_ref, w_ref, *refs):
        if has_bias:
            bias_ref, o_ref = refs
        else:
            (o_ref,) = refs
        # NOTE: ragged last row tile pushes padded rows through rsqrt; the
        # store is masked so this is numerically harmless.
        x = x_ref[...].astype(jnp.float32)
        mean = jnp.mean(x, axis=-1, keepdims=True)
        centered = x - mean
        var = jnp.mean(centered * centered, axis=-1, keepdims=True)  # biased
        xn = centered * lax.rsqrt(var + _EPS)
        xn = xn * g_ref[...].astype(jnp.float32) + beta_ref[...].astype(jnp.float32)
        acc = jnp.dot(xn.astype(w_ref.dtype), w_ref[...],
                      preferred_element_type=jnp.float32)
        if has_bias:
            acc = acc + bias_ref[...].astype(jnp.float32)
        o_ref[...] = acc.astype(o_ref.dtype)
    return kernel


def ln_matmul(x2, gamma, beta, w, bias, out_dtype):
    """x2: (rows, K); gamma/beta: (K,); w: (K, N) bf16; bias: (N,) or None."""
    rows, K = x2.shape
    N = w.shape[1]
    tm = _row_tile(rows)
    has_bias = bias is not None

    in_specs = [
        pl.BlockSpec((tm, K), lambda i: (i, 0)),
        pl.BlockSpec((1, K), lambda i: (0, 0)),
        pl.BlockSpec((1, K), lambda i: (0, 0)),
        pl.BlockSpec((K, N), lambda i: (0, 0)),   # VMEM-resident weight panel
    ]
    args = [x2, gamma.reshape(1, K), beta.reshape(1, K), w]
    if has_bias:
        in_specs.append(pl.BlockSpec((1, N), lambda i: (0, 0)))
        args.append(bias.reshape(1, N))

    block_bytes = (tm * K * x2.dtype.itemsize
                   + 2 * K * 4
                   + K * N * w.dtype.itemsize
                   + (N * 4 if has_bias else 0)
                   + tm * N * jnp.dtype(out_dtype).itemsize)

    return pl.pallas_call(
        _make_ln_matmul_kernel(has_bias),
        out_shape=jax.ShapeDtypeStruct((rows, N), out_dtype),
        grid_spec=pltpu.PrefetchScalarGridSpec(
            num_scalar_prefetch=0,
            grid=(pl.cdiv(rows, tm),),
            in_specs=in_specs,
            out_specs=pl.BlockSpec((tm, N), lambda i: (i, 0)),
        ),
        compiler_params=pltpu.CompilerParams(
            dimension_semantics=("parallel",),
            vmem_limit_bytes=_vmem_limit(block_bytes),
        ),
    )(*args)


# --------------------------------------------------------------------------
# Kernel 2: self-attention, one batch element per grid step.
#   Takes the fused (B, S, 3*D) qkv tensor; head split / merge happens on
#   VMEM values (no HBM transposes), output written in 'b n (h d)' layout.
# --------------------------------------------------------------------------
def _attention_kernel(qkv_ref, o_ref, *, num_heads, dim_heads):
    D = num_heads * dim_heads
    qkv = qkv_ref[0]                                   # (S, 3*D), bf16
    scale = 1.0 / (dim_heads ** 0.5)
    outs = []
    for h in range(num_heads):                         # static unroll (small H)
        q_h = qkv[:, h * dim_heads:(h + 1) * dim_heads]
        k_h = qkv[:, D + h * dim_heads:D + (h + 1) * dim_heads]
        v_h = qkv[:, 2 * D + h * dim_heads:2 * D + (h + 1) * dim_heads]
        # q k^T without an explicit transpose (contract last dims of both)
        s = lax.dot_general(q_h, k_h, (((1,), (1,)), ((), ())),
                            preferred_element_type=jnp.float32) * scale
        s_max = jnp.max(s, axis=-1, keepdims=True)
        p = jnp.exp(s - s_max)
        inv_l = pl.reciprocal(jnp.sum(p, axis=-1, keepdims=True), approx=True)
        attn = (p * inv_l).astype(v_h.dtype)
        outs.append(jnp.dot(attn, v_h, preferred_element_type=jnp.float32))
    o_ref[0] = jnp.concatenate(outs, axis=-1).astype(o_ref.dtype)


def attention(qkv3, *, num_heads, dim_heads):
    """qkv3: (B, S, 3*D) -> (B, S, D) in 'b n (h d)' layout."""
    B, S, threeD = qkv3.shape
    D = num_heads * dim_heads
    assert threeD == 3 * D

    kernel = functools.partial(_attention_kernel,
                               num_heads=num_heads, dim_heads=dim_heads)
    block_bytes = (S * 3 * D * qkv3.dtype.itemsize
                   + S * D * qkv3.dtype.itemsize
                   + num_heads * S * S * 4)            # f32 score tiles

    return pl.pallas_call(
        kernel,
        out_shape=jax.ShapeDtypeStruct((B, S, D), qkv3.dtype),
        grid_spec=pltpu.PrefetchScalarGridSpec(
            num_scalar_prefetch=0,
            grid=(B,),
            in_specs=[pl.BlockSpec((1, S, 3 * D), lambda b: (b, 0, 0))],
            out_specs=pl.BlockSpec((1, S, D), lambda b: (b, 0, 0)),
        ),
        compiler_params=pltpu.CompilerParams(
            dimension_semantics=("parallel",),
            vmem_limit_bytes=_vmem_limit(block_bytes),
        ),
    )(qkv3)


# --------------------------------------------------------------------------
# Kernel 3: matmul (+ optional bias) + residual:  out = res + y @ W (+ b)
# --------------------------------------------------------------------------
def _make_matmul_residual_kernel(has_bias):
    def kernel(y_ref, w_ref, *refs):
        if has_bias:
            bias_ref, r_ref, o_ref = refs
        else:
            r_ref, o_ref = refs
        acc = jnp.dot(y_ref[...], w_ref[...], preferred_element_type=jnp.float32)
        if has_bias:
            acc = acc + bias_ref[...].astype(jnp.float32)
        o_ref[...] = (acc + r_ref[...].astype(jnp.float32)).astype(o_ref.dtype)
    return kernel


def matmul_residual(y, w, bias, res):
    rows, K = y.shape
    N = w.shape[1]
    tm = _row_tile(rows)
    has_bias = bias is not None

    in_specs = [
        pl.BlockSpec((tm, K), lambda i: (i, 0)),
        pl.BlockSpec((K, N), lambda i: (0, 0)),
    ]
    args = [y, w]
    if has_bias:
        in_specs.append(pl.BlockSpec((1, N), lambda i: (0, 0)))
        args.append(bias.reshape(1, N))
    in_specs.append(pl.BlockSpec((tm, N), lambda i: (i, 0)))
    args.append(res)

    block_bytes = (tm * K * y.dtype.itemsize + K * N * w.dtype.itemsize
                   + (N * 4 if has_bias else 0)
                   + 2 * tm * N * res.dtype.itemsize)

    return pl.pallas_call(
        _make_matmul_residual_kernel(has_bias),
        out_shape=jax.ShapeDtypeStruct((rows, N), res.dtype),
        grid_spec=pltpu.PrefetchScalarGridSpec(
            num_scalar_prefetch=0,
            grid=(pl.cdiv(rows, tm),),
            in_specs=in_specs,
            out_specs=pl.BlockSpec((tm, N), lambda i: (i, 0)),
        ),
        compiler_params=pltpu.CompilerParams(
            dimension_semantics=("parallel",),
            vmem_limit_bytes=_vmem_limit(block_bytes),
        ),
    )(*args)


# --------------------------------------------------------------------------
# Kernel 4: fused GLU gate + matmul + bias + residual:
#   a, g = split(h2);  out = res + (a * silu(g)) @ W + b
# --------------------------------------------------------------------------
def _glu_matmul_residual_kernel(h_ref, w_ref, bias_ref, r_ref, o_ref):
    inner = w_ref.shape[0]
    h = h_ref[...].astype(jnp.float32)                  # (tm, 2*inner)
    a = h[:, :inner]
    g = h[:, inner:]
    lhs = (a * jax.nn.silu(g)).astype(w_ref.dtype)      # bf16 matmul input
    acc = jnp.dot(lhs, w_ref[...], preferred_element_type=jnp.float32)
    o_ref[...] = (acc + bias_ref[...].astype(jnp.float32)
                  + r_ref[...].astype(jnp.float32)).astype(o_ref.dtype)


def glu_matmul_residual(h2, w, bias, res):
    rows, two_inner = h2.shape
    inner, N = w.shape
    assert two_inner == 2 * inner
    tm = _row_tile(rows)

    block_bytes = (tm * two_inner * h2.dtype.itemsize
                   + inner * N * w.dtype.itemsize
                   + N * 4
                   + 2 * tm * N * res.dtype.itemsize)

    return pl.pallas_call(
        _glu_matmul_residual_kernel,
        out_shape=jax.ShapeDtypeStruct((rows, N), res.dtype),
        grid_spec=pltpu.PrefetchScalarGridSpec(
            num_scalar_prefetch=0,
            grid=(pl.cdiv(rows, tm),),
            in_specs=[
                pl.BlockSpec((tm, two_inner), lambda i: (i, 0)),
                pl.BlockSpec((inner, N), lambda i: (0, 0)),
                pl.BlockSpec((1, N), lambda i: (0, 0)),
                pl.BlockSpec((tm, N), lambda i: (i, 0)),
            ],
            out_specs=pl.BlockSpec((tm, N), lambda i: (i, 0)),
        ),
        compiler_params=pltpu.CompilerParams(
            dimension_semantics=("parallel",),
            vmem_limit_bytes=_vmem_limit(block_bytes),
        ),
    )(h2, w, bias.reshape(1, N), res)


# --------------------------------------------------------------------------
# TransformerBlock forward (no context / mask / rotary / global_cond path):
#   x = x + to_out( attn( to_qkv( pre_norm(x) ) ) )
#   x = x + ff_out( GLU( ff_in( ff_norm(x) ) ) )
# --------------------------------------------------------------------------
def transformer_block(x, params):
    B, S, D = x.shape
    Dh = params["dim_heads"]
    H = D // Dh
    rows = B * S
    x2 = x.reshape(rows, D)
    bf16 = jnp.bfloat16

    # bf16 weights -> halved weight DMA, bf16 MXU rate with f32 accumulation.
    w_qkv = params["w_qkv"].astype(bf16)
    w_attn_out = params["w_attn_out"].astype(bf16)
    w_ff_in = params["w_ff_in"].astype(bf16)
    w_ff_out = params["w_ff_out"].astype(bf16)

    # --- self-attention branch: pre_norm fused into the (bias-less) QKV proj
    qkv = ln_matmul(x2, params["pre_norm_gamma"], params["pre_norm_beta"],
                    w_qkv, bias=None, out_dtype=bf16)           # (rows, 3D) bf16
    # head split/merge fused into the attention kernel (no HBM transposes)
    attn = attention(qkv.reshape(B, S, 3 * D), num_heads=H, dim_heads=Dh)
    # to_out (bias-less) fused with the residual add
    x2 = matmul_residual(attn.reshape(rows, D), w_attn_out, bias=None, res=x2)

    # --- feed-forward branch: ff_norm fused into the GLU in-projection
    h2 = ln_matmul(x2, params["ff_norm_gamma"], params["ff_norm_beta"],
                   w_ff_in, bias=params["b_ff_in"], out_dtype=bf16)
    # GLU gate + out-projection + bias + residual, fused
    x2 = glu_matmul_residual(h2, w_ff_out, params["b_ff_out"], x2)

    return x2.reshape(B, S, D)


# --------------------------------------------------------------------------
# Pure-JAX f32 reference (matches the PyTorch module's math path)
# --------------------------------------------------------------------------
def _reference(x, params):
    B, S, D = x.shape
    Dh = params["dim_heads"]
    H = D // Dh

    def ln(t, g, b):
        m = jnp.mean(t, axis=-1, keepdims=True)
        v = jnp.mean((t - m) ** 2, axis=-1, keepdims=True)
        return (t - m) / jnp.sqrt(v + _EPS) * g + b

    h = ln(x, params["pre_norm_gamma"], params["pre_norm_beta"])
    qkv = h @ params["w_qkv"]
    q, k, v = jnp.split(qkv, 3, axis=-1)
    q = q.reshape(B, S, H, Dh).transpose(0, 2, 1, 3)
    k = k.reshape(B, S, H, Dh).transpose(0, 2, 1, 3)
    v = v.reshape(B, S, H, Dh).transpose(0, 2, 1, 3)
    s = jnp.einsum("bhid,bhjd->bhij", q, k) * (1.0 / (Dh ** 0.5))
    a = jax.nn.softmax(s, axis=-1)
    o = jnp.einsum("bhij,bhjd->bhid", a, v)
    o = o.transpose(0, 2, 1, 3).reshape(B, S, D)
    x = x + o @ params["w_attn_out"]

    h = ln(x, params["ff_norm_gamma"], params["ff_norm_beta"])
    h2 = h @ params["w_ff_in"] + params["b_ff_in"]
    inner = params["w_ff_out"].shape[0]
    ff = (h2[..., :inner] * jax.nn.silu(h2[..., inner:])) @ params["w_ff_out"] \
        + params["b_ff_out"]
    return x + ff


if __name__ == "__main__":
    # dim=128 (lane-dense), dim_heads=64 -> 2 heads, seq=8, batch=2
    B, S, D, Dh = 2, 8, 128, 64
    inner = 4 * D  # FeedForward mult=4

    key = jax.random.PRNGKey(0)
    keys = jax.random.split(key, 8)
    x = jax.random.normal(keys[0], (B, S, D), dtype=jnp.float32)

    w_std = 0.02
    # NOTE: the PyTorch module zero-inits to_out / ff out-projection
    # (zero_init_branch_outputs=True); random weights here exercise the same
    # computation with a non-trivial result.
    params = {
        "dim_heads": Dh,
        "pre_norm_gamma": jnp.ones((D,), jnp.float32),
        "pre_norm_beta": jnp.zeros((D,), jnp.float32),          # bias=False
        "w_qkv": jax.random.normal(keys[1], (D, 3 * D), jnp.float32) * w_std,
        "w_attn_out": jax.random.normal(keys[2], (D, D), jnp.float32) * w_std,
        "ff_norm_gamma": jnp.ones((D,), jnp.float32),
        "ff_norm_beta": jnp.zeros((D,), jnp.float32),
        "w_ff_in": jax.random.normal(keys[3], (D, 2 * inner), jnp.float32) * w_std,
        "b_ff_in": jax.random.normal(keys[4], (2 * inner,), jnp.float32) * w_std,
        "w_ff_out": jax.random.normal(keys[5], (inner, D), jnp.float32) * w_std,
        "b_ff_out": jax.random.normal(keys[6], (D,), jnp.float32) * w_std,
    }

    y = transformer_block(x, params)
    jax.block_until_ready(y)

    ref = _reference(x, params)
    err = float(jnp.max(jnp.abs(y - ref)))
    assert err < 2e-2, f"max abs err vs reference: {err}"

    print("KERNEL_OK")
</pallas_src>

<mosaic_0001>
module attributes {stable_mosaic.version = 11 : i64} {
  func.func @kernel(%arg0: i32, %arg1: memref<8x128xf32, #tpu.memory_space<vmem>>, %arg2: memref<1x128xf32, #tpu.memory_space<vmem>>, %arg3: memref<1x128xf32, #tpu.memory_space<vmem>>, %arg4: memref<128x384xbf16, #tpu.memory_space<vmem>>, %arg5: memref<8x384xbf16, #tpu.memory_space<vmem>>) attributes {dimension_semantics = [#tpu.dimension_semantics<parallel>], iteration_bounds = array<i64: 2>, scalar_prefetch = 0 : i64, scratch_operands = 0 : i64, tpu.core_type = #tpu.core_type<tc>, window_params = [{transform_indices = @transform_0, window_bounds = array<i64: 8, 128>}, {pipeline_mode = #tpu.pipeline_mode<synchronous>, transform_indices = @transform_1, window_bounds = array<i64: 1, 128>}, {pipeline_mode = #tpu.pipeline_mode<synchronous>, transform_indices = @transform_2, window_bounds = array<i64: 1, 128>}, {pipeline_mode = #tpu.pipeline_mode<synchronous>, transform_indices = @transform_3, window_bounds = array<i64: 128, 384>}, {transform_indices = @transform_4, window_bounds = array<i64: 8, 384>}]} {
    %c0 = arith.constant 0 : index
    %c0_0 = arith.constant 0 : index
    %0 = vector.load %arg1[%c0, %c0_0] : memref<8x128xf32, #tpu.memory_space<vmem>>, vector<8x128xf32>
    %cst = arith.constant dense<0.000000e+00> : vector<8xf32>
    %1 = vector.multi_reduction <add>, %0, %cst [1] : vector<8x128xf32> to vector<8xf32>
    %2 = vector.shape_cast %1 : vector<8xf32> to vector<8x1xf32>
    %cst_1 = arith.constant 1.280000e+02 : f32
    %3 = vector.broadcast %cst_1 : f32 to vector<8x1xf32>
    %4 = arith.divf %2, %3 : vector<8x1xf32>
    %5 = vector.broadcast %4 : vector<8x1xf32> to vector<8x128xf32>
    %6 = arith.subf %0, %5 : vector<8x128xf32>
    %7 = arith.mulf %6, %6 : vector<8x128xf32>
    %cst_2 = arith.constant dense<0.000000e+00> : vector<8xf32>
    %8 = vector.multi_reduction <add>, %7, %cst_2 [1] : vector<8x128xf32> to vector<8xf32>
    %9 = vector.shape_cast %8 : vector<8xf32> to vector<8x1xf32>
    %cst_3 = arith.constant 1.280000e+02 : f32
    %10 = vector.broadcast %cst_3 : f32 to vector<8x1xf32>
    %11 = arith.divf %9, %10 : vector<8x1xf32>
    %cst_4 = arith.constant 9.99999974E-6 : f32
    %12 = vector.broadcast %cst_4 : f32 to vector<8x1xf32>
    %13 = arith.addf %11, %12 : vector<8x1xf32>
    %14 = math.rsqrt %13 : vector<8x1xf32>
    %15 = vector.broadcast %14 : vector<8x1xf32> to vector<8x128xf32>
    %16 = arith.mulf %6, %15 : vector<8x128xf32>
    %c0_5 = arith.constant 0 : index
    %c0_6 = arith.constant 0 : index
    %17 = vector.load %arg2[%c0_5, %c0_6] : memref<1x128xf32, #tpu.memory_space<vmem>>, vector<1x128xf32>
    %18 = vector.broadcast %17 : vector<1x128xf32> to vector<8x128xf32>
    %19 = arith.mulf %16, %18 : vector<8x128xf32>
    %c0_7 = arith.constant 0 : index
    %c0_8 = arith.constant 0 : index
    %20 = vector.load %arg3[%c0_7, %c0_8] : memref<1x128xf32, #tpu.memory_space<vmem>>, vector<1x128xf32>
    %21 = vector.broadcast %20 : vector<1x128xf32> to vector<8x128xf32>
    %22 = arith.addf %19, %21 : vector<8x128xf32>
    %23 = arith.truncf %22 : vector<8x128xf32> to vector<8x128xbf16>
    %c0_9 = arith.constant 0 : index
    %c0_10 = arith.constant 0 : index
    %24 = vector.load %arg4[%c0_9, %c0_10] : memref<128x384xbf16, #tpu.memory_space<vmem>>, vector<128x384xbf16>
    %cst_11 = arith.constant dense<0.000000e+00> : vector<8x384xf32>
    %25 = tpu.matmul %23, %24, %cst_11 {dimension_numbers = #tpu.dot_dimension_numbers<[1], [0], [0], [1], [0, 0, 1, 1], [], []>} : vector<8x128xbf16>, vector<128x384xbf16>, vector<8x384xf32> -> vector<8x384xf32>
    %26 = arith.truncf %25 : vector<8x384xf32> to vector<8x384xbf16>
    %c0_12 = arith.constant 0 : index
    %c0_13 = arith.constant 0 : index
    %27 = vector.load %arg5[%c0_12, %c0_13] : memref<8x384xbf16, #tpu.memory_space<vmem>>, vector<8x384xbf16>
    tpu.vector_store %arg5[%c0_12, %c0_13], %26 {strides = array<i32>} : memref<8x384xbf16, #tpu.memory_space<vmem>>, vector<8x384xbf16>,
    return
  }
  func.func @transform_0(%arg0: i32) -> (i32, i32) {
    %c0_i32 = arith.constant 0 : i32
    %c0_i32_0 = arith.constant 0 : i32
    return %arg0, %c0_i32 : i32, i32
  }
  func.func @transform_1(%arg0: i32) -> (i32, i32) {
    %c0_i32 = arith.constant 0 : i32
    %c0_i32_0 = arith.constant 0 : i32
    %c0_i32_1 = arith.constant 0 : i32
    return %c0_i32, %c0_i32_0 : i32, i32
  }
  func.func @transform_2(%arg0: i32) -> (i32, i32) {
    %c0_i32 = arith.constant 0 : i32
    %c0_i32_0 = arith.constant 0 : i32
    %c0_i32_1 = arith.constant 0 : i32
    return %c0_i32, %c0_i32_0 : i32, i32
  }
  func.func @transform_3(%arg0: i32) -> (i32, i32) {
    %c0_i32 = arith.constant 0 : i32
    %c0_i32_0 = arith.constant 0 : i32
    %c0_i32_1 = arith.constant 0 : i32
    return %c0_i32, %c0_i32_0 : i32, i32
  }
  func.func @transform_4(%arg0: i32) -> (i32, i32) {
    %c0_i32 = arith.constant 0 : i32
    %c0_i32_0 = arith.constant 0 : i32
    return %arg0, %c0_i32 : i32, i32
  }
}

</mosaic_0001>

<bundles_post_ra>
// kernel: tpu_custom_call.1
= control target key start
LH: loop header
LB: loop body
LE: loop exit
PB: predicated region body
PF: predicated region fallthrough
CT: control target
= control target key end

     0   :  { %9 = vsyncpa [#allocation3], 0  ;;  %s1109_s0 = inlined_call_operand.hbm [shape: f32[16,128], index: 0, kind: input, shape index: {}]   ;;  %s1110_s1 = inlined_call_operand.vmem [shape: f32[1,128], index: 1, kind: input, shape index: {}]   ;;  %s1111_s2 = inlined_call_operand.vmem [shape: f32[1,128], index: 2, kind: input, shape index: {}]   ;;  %s1112_s3 = inlined_call_operand.hbm [shape: bf16[128,384], index: 3, kind: input, shape index: {}]   ;;  %s1113_s4 = inlined_call_operand.hbm [shape: bf16[16,384], index: 4, kind: output, shape index: {}]  }
   0x1   :  { %11 = vsyncpa [#allocation3 + $0x1], 0 }
   0x2   :  { %12 = vsyncpa [#allocation6], 0 }
   0x3   :  { %13 = vsyncpa [#allocation4], 0 }
   0x4   :  { %15 = vsyncpa [#allocation4 + $0x1], 0  ;;  %s936_s15 = smov 0   ;;  %s938_s16 = smov 0  }
   0x5   :  { %s940_s17 = smov 0   ;;  %s942_s18 = smov 0  }
   0x6 LB: > { %s957_s19 = sadd.s32 4294967295, %s901_s18   ;;  %s610_s20 = sadd.s32 4294967294, %s901_s18   ;;  %s901_s18 = sphi %s942_s18, %s1135_s18   ;;  %s897_s17 = sphi %s940_s17, %s1134_s17   ;;  %s893_s16 = sphi %s938_s16, %s1133_s16   ;;  %s889_s15 = sphi %s936_s15, %s1132_s15  }
   0x7   : > { %p41_p0 = scmp.ne.s32.totalorder %s893_s16, %s889_s15  ;;  %p1114_p1 = scmp.eq.s32.totalorder %s957_s19, 0 }
   0x8   : > { %p134_p3 = scmp.eq.s32.totalorder %s610_s20, 1  ;;  %p611_p5 = scmp.ge.s32.totalorder %s901_s18, 1 }
   0x9   : > { %p966_p4 = por %p1114_p1, %p41_p0  ;;  %p141_p7 = scmp.lt.s32.totalorder %s901_s18, 3 }
   0xa   : > { %p971_p6 = por %p134_p3, %p41_p0  ;;  %s903_s24 = smov [#allocation5]  }
   0xb   : > { %s1118_s21 = scalar_select %p966_p4, 1, 0 }
   0xc   : > { %s1119_s22 = scalar_select %p971_p6, 1, 0 }
   0xd   : > { %p976_p8 = pnand %p611_p5, %p141_p7  ;;  %s159_s25 = sshll.u32 %s903_s24, 4  ;;  %s160_s25 = int_to_ptr.vmem [resolvable:$true] %s159_s25 }
   0xe   : > { %s990_s27 = sadd.s32 1, %s901_s18   ;;  %s28_s28 = sadd.s32 1, %s897_s17 }
   0xf   : > { %s1120_s23 = scalar_select %p976_p8, 1, 0 }
  0x10   : > { %p691_p9 = pneg %p976_p8  ;;  %s25_s29 = ssub.s32 %s901_s18, %s990_s27 }
  0x11   : > { %s790_s30 = scalar_lea.vmem %s160_s25, 3072  ;;  %p798_p5 = scmp.lt.s32.totalorder %s160_s25, %s160_s25 }
  0x12   : > { %p985_p11 = pnand %p691_p9, %p1114_p1  ;;  %p791_p13 = scmp.ne.s32.totalorder %s160_s25, %s790_s30 }
  0x13   : > { %p799_p7 = scmp.lt.s32.totalorder %s790_s30, %s790_s30 }
  0x14   : > { %p781_p12 = pneg %p985_p11 }
  0x15   : > { %p800_p10 = por %p799_p7, %p798_p5 }
  0x16   : > { %p793_p0 = pnand %p791_p13, %p781_p12 }
  0x18   : > { %p794_p3 = pneg %p793_p0 }
  0x1a   : > { %p801_p2 = pnand %p800_p10, %p794_p3 }
  0x1c   : > { %804 = shalt.err (!%p801_p2)
}
  0x1d   : > { %s904_s5 = smov 192   ;;  %s905_s6 = smov 12  }
  0x1e   : > { %694 = dma.hbm_to_vmem [thread:$0]  (!%p985_p11), %s1112_s3, 3072, %s160_s25, [#allocation6], %s904_s5, %s904_s5, %s905_s6  }
  0x1f   : > { %p26_p9 = scmp.eq.s32.totalorder %s25_s29, 0  ;;  %p35_p12 = scmp.ne.s32.totalorder %s897_s17, %s893_s16 }
  0x20   : > { %p36_p10 = scmp.eq.s32.totalorder %s901_s18, 0  ;;  %p704_p2 = scmp.lt.s32.totalorder %s901_s18, 2 }
  0x21   : > { %s1007_s9 = scalar_select %p26_p9, %s897_s17, %s28_s28  }
  0x22   : > { %p37_p13 = por %p36_p10, %p35_p12  ;;  %p1122_p0 = scmp.eq.s32.totalorder %s957_s19, 1 }
  0x23   : > { %s173_s11 = sand.u32 1, %s897_s17   ;;  %s615_s12 = sshll.u32 %s901_s18, 7 }
  0x24   : > { %p1011_p3 = por %p1122_p0, %p35_p12  ;;  %s614_s13 = sshll.u32 %s173_s11, 3 }
  0x25   : > { %s1020_s24 = scalar_lea.hbm %s1109_s0, %s615_s12  ;;  %s177_s25 = scalar_lea.vmem [#allocation2], %s614_s13 }
  0x26   : > { %s1123_s10 = scalar_select %p1011_p3, 1, 0 }
  0x27   : > { %s184_s26 = sshll.u32 %s177_s25, 4  ;;  %p1022_p11 = pnand %p704_p2, %p37_p13  ;;  %s185_s26 = int_to_ptr.vmem [resolvable:$true] %s184_s26 }
  0x28   : > { %s174_s29 = scalar_lea.sflag [#allocation3], %s173_s11  ;;  %s805_s30 = scalar_lea.hbm %s1020_s24, 128 }
  0x29   : > { %p806_p5 = scmp.ne.s32.totalorder %s1020_s24, %s805_s30  ;;  %p807_p7 = pneg %p1022_p11 }
  0x2a   : > { %s810_s7 = scalar_lea.hbm %s1109_s0, 256  ;;  %p811_p10 = scmp.lt.s32.totalorder %s1020_s24, %s1109_s0 }
  0x2b   : > { %p808_p9 = pnand %p807_p7, %p806_p5  ;;  %p812_p2 = scmp.lt.s32.totalorder %s810_s7, %s805_s30 }
  0x2d   : > { %p809_p12 = pneg %p808_p9  ;;  %p813_p13 = por %p812_p2, %p811_p10 }
  0x2f   : > { %p814_p0 = pnand %p813_p13, %p809_p12 }
  0x31   : > { %817 = shalt.err (!%p814_p0)
}
  0x32   : > { %s818_s13 = scalar_lea.vmem %s185_s26, 128  ;;  %s906_s11 = smov [#allocation2]  }
  0x33   : > { %p819_p1 = scmp.ne.s32.totalorder %s185_s26, %s818_s13  ;;  %s823_s14 = sshll.u32 %s906_s11, 4  ;;  %s824_s14 = int_to_ptr.vmem [resolvable:$false] %s823_s14 }
  0x34   : > { %s825_s20 = scalar_lea.vmem %s824_s14, 256  ;;  %p826_p5 = scmp.lt.s32.totalorder %s185_s26, %s824_s14 }
  0x35   : > { %p821_p6 = pnand %p819_p1, %p807_p7  ;;  %p827_p9 = scmp.lt.s32.totalorder %s825_s20, %s818_s13 }
  0x37   : > { %p822_p3 = pneg %p821_p6  ;;  %p828_p4 = por %p827_p9, %p826_p5 }
  0x39   : > { %p829_p8 = pnand %p828_p4, %p822_p3 }
  0x3b   : > { %832 = shalt.err (!%p829_p8)
}
  0x3c   : > { %698 = dma.hbm_to_vmem [thread:$0]  (!%p1022_p11), %s1020_s24, 128, %s185_s26, %s174_s29  }
  0x3d   : > { %p1125_p12 = scmp.ne.s32.totalorder %s1120_s23, 0 }
  0x3e   : > { %s1043_s25 = sand.u32 (!%p1125_p12), 1, %s893_s16   ;;  %p1126_p1 = scmp.ne.s32.totalorder (!%p1125_p12), %s1118_s21, 0 }
  0x3f   : > { %193 = sbr.rel (%p1125_p12) target bundleno = 592 (0x250), region = 36  ;;  %s617_s30 = sshll.u32 (!%p1125_p12), %s1043_s25, 3 }
  0x40   : > { %s196_s5 = scalar_lea.sflag (!%p1125_p12), [#allocation3], %s1043_s25  ;;  %s199_s6 = scalar_lea.vmem (!%p1125_p12), [#allocation2], %s617_s30 }
  0x44   : > { %876 = dma.done.wait (%p1126_p1), %s196_s5, 128  }
  0x45   : > { %878 = vsyncadd (%p1126_p1), %s196_s5, 4294967168  ;;  %p1127_p4 = scmp.eq.s32.totalorder %s957_s19, 0 }
  0x47   : > { %880 = dma.done.wait (%p1127_p4), [#allocation6], 3072   ;;  %p1128_p6 = pmov %p1127_p4 }
  0x48   : > { %v229_v0 = vld [vmem:[%s199_s6] sm:$0xff]  ;;  %v907_v3 = vmov 0.0   ;;  %v756_v14 = vld [vmem:[#allocation5 + $0x80] ss:$12 sps:$4 sm:$0xff]   ;;  %v908_v22 = vmov 0   ;;  %vm909_vm0 = vmmov 0  }
  0x49   : > { %882 = vsyncadd (%p1128_p6), [#allocation6], 4294964224  ;;  %230 = vadd.xlane.f32.xlu0 %v229_v0  ;;  %v745_v1 = vld [vmem:[#allocation5 + $0xac] ss:$12 sps:$4 sm:$0xff]   ;;  %v747_v2 = vld [vmem:[#allocation5 + $0xa8] ss:$12 sps:$4 sm:$0xff]   ;;  %661 = vmatprep.subr.bf16.mxu1 %v907_v3 }
  0x4a   : > { %v748_v4 = vld [vmem:[#allocation5 + $0xb0] ss:$12 sps:$4 sm:$0xff]   ;;  %v749_v5 = vld [vmem:[#allocation5 + $0x94] ss:$12 sps:$4 sm:$0xff]   ;;  %419 = vmatprep.subr.bf16.mxu0 %v745_v1  ;;  %v752_v7 = vld [vmem:[#allocation5 + $0x98] ss:$12 sps:$4 sm:$0xff]   ;;  %451 = vmatprep.mubr.bf16.mxu0 %v908_v22 }
  0x4b   : > { %420 = vmatpush1.bf16.msra.mxu0 %v747_v2  ;;  %662 = vmatpush3.bf16.msra.mxu1 %v748_v4  ;;  %v751_v6 = vld [vmem:[#allocation5 + $0x90] ss:$12 sps:$4 sm:$0xff]   ;;  %v755_v13 = vld [vmem:[#allocation5 + $0x78] ss:$12 sps:$4 sm:$0xff]   ;;  %v759_v16 = vld [vmem:[#allocation5 + $0x60] ss:$12 sps:$4 sm:$0xff]  }
  0x4c   : > { %421 = vmatprep.subr.bf16.mxu0 %v749_v5  ;;  %663 = vmatprep.subr.bf16.mxu1 %v907_v3  ;;  %v753_v12 = vld [vmem:[#allocation5 + $0x7c] ss:$12 sps:$4 sm:$0xff]   ;;  %v757_v15 = vld [vmem:[#allocation5 + $0x64] ss:$12 sps:$4 sm:$0xff]   ;;  %v761_v18 = vld [vmem:[#allocation5 + $0x4c] ss:$12 sps:$4 sm:$0xff]  }
  0x4d   : > { %v760_v17 = vld [vmem:[#allocation5 + $0x68] ss:$12 sps:$4 sm:$0xff]   ;;  %v764_v20 = vld [vmem:[#allocation5 + $0x50] ss:$12 sps:$4 sm:$0xff]   ;;  %677 = vmatprep.mubr.msk.bf16.mxu1 %vm909_vm0, %v907_v3  ;;  %v768_v24 = vld [vmem:[#allocation5 + $0x38] ss:$12 sps:$4 sm:$0xff]  }
  0x4e   : > { %v763_v19 = vld [vmem:[#allocation5 + $0x48] ss:$12 sps:$4 sm:$0xff]   ;;  %v767_v23 = vld [vmem:[#allocation5 + $0x30] ss:$12 sps:$4 sm:$0xff]   ;;  %v771_v26 = vld [vmem:[#allocation5 + $0x18] ss:$12 sps:$4 sm:$0xff]  }
  0x4f   : > { %422 = vmatpush1.bf16.msra.mxu0 %v751_v6  ;;  %664 = vmatpush3.bf16.msra.mxu1 %v752_v7  ;;  %v765_v21 = vld [vmem:[#allocation5 + $0x34] ss:$12 sps:$4 sm:$0xff]   ;;  %v769_v25 = vld [vmem:[#allocation5 + $0x1c] ss:$12 sps:$4 sm:$0xff]   ;;  %v773_v28 = vld [vmem:[#allocation5 + $0x4] ss:$12 sps:$4 sm:$0xff]  }
  0x50   : > { %665 = vmatprep.subr.bf16.mxu1 %v907_v3  ;;  %423 = vmatprep.subr.bf16.mxu0 %v753_v12  ;;  %v772_v27 = vld [vmem:[#allocation5 + $0x20] ss:$12 sps:$4 sm:$0xff]   ;;  %v776_v30 = vld [vmem:[#allocation5 + $0x8] ss:$12 sps:$4 sm:$0xff]   ;;  %v619_v35 = vld [vmem:[%s1110_s1] ss:$0 sm:$0xff] }
  0x51   : > { %v775_v29 = vld [vmem:[#allocation5] ss:$12 sps:$4 sm:$0xff]   ;;  %v620_v37 = vld [vmem:[%s1111_s2] ss:$0 sm:$0xff]  ;;  %s681_s28 = smul.u32 12, %s1043_s25  ;;  %p1129_p3 = scmp.ne.s32.totalorder %s1123_s10, 0 }
  0x52   : > { %s682_s29 = smul.u32 192, %s957_s19  ;;  %s516_s19 = scalar_lea.sflag [#allocation4], %s1043_s25 }
  0x53   : > { %424 = vmatpush1.bf16.msra.mxu0 %v755_v13  ;;  %666 = vmatpush3.bf16.msra.mxu1 %v756_v14  ;;  %s227_s7 = scalar_lea.vmem [#allocation7], %s681_s28  ;;  %s910_s20 = smov [#allocation7]  }
  0x54   : > { %667 = vmatprep.subr.bf16.mxu1 %v907_v3  ;;  %425 = vmatprep.subr.bf16.mxu0 %v757_v15  ;;  %s530_s8 = sshll.u32 %s227_s7, 4  ;;  %s1066_s11 = scalar_lea.hbm %s1113_s4, %s682_s29  ;;  %s1068_s8 = int_to_ptr.vmem [resolvable:$true] %s530_s8 }
  0x55   : > { %s833_s14 = scalar_lea.vmem %s1068_s8, 192  ;;  %s837_s30 = sshll.u32 %s910_s20, 4  ;;  %s838_s30 = int_to_ptr.vmem [resolvable:$false] %s837_s30 }
  0x56   : > { %p834_p8 = scmp.ne.s32.totalorder %s1068_s8, %s833_s14  ;;  %s839_s5 = scalar_lea.vmem %s838_s30, 384 }
  0x57   : > { %426 = vmatpush1.bf16.msra.mxu0 %v759_v16  ;;  %668 = vmatpush3.bf16.msra.mxu1 %v760_v17  ;;  %p840_p10 = scmp.lt.s32.totalorder %s1068_s8, %s838_s30  ;;  %p841_p2 = scmp.lt.s32.totalorder %s839_s5, %s833_s14 }
  0x58   : > { %427 = vmatprep.subr.bf16.mxu0 %v761_v18  ;;  %669 = vmatprep.subr.bf16.mxu1 %v907_v3  ;;  %p835_p11 = pnand %p834_p8, %p1129_p3 }
  0x59   : > { %p842_p13 = por %p841_p2, %p840_p10 }
  0x5a   : > { %p836_p7 = pneg %p835_p11 }
  0x5b   : > { %428 = vmatpush1.bf16.msra.mxu0 %v763_v19  ;;  %670 = vmatpush3.bf16.msra.mxu1 %v764_v20 }
  0x5c   : > { %429 = vmatprep.subr.bf16.mxu0 %v765_v21  ;;  %671 = vmatprep.subr.bf16.mxu1 %v907_v3  ;;  %p843_p0 = pnand %p842_p13, %p836_p7 }
  0x5f   : > { %430 = vmatpush1.bf16.msra.mxu0 %v767_v23  ;;  %672 = vmatpush3.bf16.msra.mxu1 %v768_v24 }
  0x60   : > { %431 = vmatprep.subr.bf16.mxu0 %v769_v25  ;;  %673 = vmatprep.subr.bf16.mxu1 %v907_v3 }
  0x63   : > { %432 = vmatpush1.bf16.msra.mxu0 %v771_v26  ;;  %674 = vmatpush3.bf16.msra.mxu1 %v772_v27 }
  0x64   : > { %433 = vmatprep.subr.bf16.mxu0 %v773_v28  ;;  %675 = vmatprep.subr.bf16.mxu1 %v907_v3 }
  0x67   : > { %434 = vmatpush1.bf16.msra.mxu0 %v775_v29  ;;  %676 = vmatpush3.bf16.msra.mxu1 %v776_v30 }
  0xd2   : > { %v231_v8 = vpop.xlane.xlu0 %230 }
  0xd3   : > { %v233_v9 = vmul.f32 0.0078125, %v231_v8 }
  0xd5   : > { %v234_v10 = vsub.f32 %v229_v0, %v233_v9 }
  0xd7   : > { %v235_v11 = vmul.f32 %v234_v10, %v234_v10 }
  0xd9   : > { %236 = vadd.xlane.f32.xlu0 %v235_v11 }
 0x162   : > { %v237_v31 = vpop.xlane.xlu0 %236 }
 0x163   : > { %v238_v32 = vmul.f32 0.0078125, %v237_v31 }
 0x165   : > { %v239_v33 = vadd.f32 1e-05, %v238_v32 }
 0x167   : > { %777 = vrsqrt.f32 %v239_v33 }
 0x174   : > { %v778_v34 = vpop.eup %777 }
 0x175   : > { %v241_v36 = vmul.f32 %v778_v34, %v234_v10 }
 0x177   : > { %v249_v38 = vmul.f32 %v619_v35, %v241_v36 }
 0x179   : > { %v257_v39 = vadd.f32 %v620_v37, %v249_v38 }
 0x17b   : > { %v258_v40 = vpack.c.bf16 %v257_v39, %v257_v39 }
 0x17d   : > { %452 = vmatmul.mubr.bf16.vlgmr.msra.gmra.mxu0 %v258_v40  ;;  %678 = vmatmul.mubr.bf16.vlgmr.msra.gmra.mxu1 %v258_v40 }
 0x23d   : > { %v453_v41 = vpop.f32.mrf.mxu0  ;;  %v494_v42 = vpop.f32.mrf.mxu1 }
 0x23e   : > { %v651_v43 = vpack.c.bf16 %v494_v42, %v494_v42 }
 0x23f   : > { %v455_v44 = vpop.f32.mrf.mxu0  ;;  %v679_v45 = vpop.f32.mrf.mxu1 }
 0x240   : > { %514 = vst [vmem:[%s227_s7 + $0x8] sm:$0xf] %v651_v43  ;;  %v650_v46 = vpack.c.bf16 %v455_v44, %v453_v41 }
 0x241   : > { %v457_v47 = vpop.f32.mrf.mxu0  ;;  %v497_v48 = vpop.f32.mrf.mxu1 }
 0x242   : > { %513 = vst [vmem:[%s227_s7] sm:$0xff] %v650_v46 }
 0x243   : > { %v458_v49 = vpop.f32.mrf.mxu0  ;;  %v680_v50 = vpop.f32.mrf.mxu1 }
 0x244   : > { %846 = shalt.err (!%p843_p0)
}
 0x245   : > { %s847_s6 = scalar_lea.hbm %s1066_s11, 192  ;;  %s851_s23 = scalar_lea.hbm %s1113_s4, 384 }
 0x246   : > { %p848_p5 = scmp.ne.s32.totalorder %s1066_s11, %s847_s6  ;;  %p852_p1 = scmp.lt.s32.totalorder %s1066_s11, %s1113_s4 }
 0x247   : > { %p853_p4 = scmp.lt.s32.totalorder %s851_s23, %s847_s6 }
 0x248   : > { %p849_p9 = pnand %p848_p5, %p1129_p3 }
 0x249   : > { %p854_p6 = por %p853_p4, %p852_p1 }
 0x24a   : > { %p850_p12 = pneg %p849_p9 }
 0x24c   : > { %p855_p8 = pnand %p854_p6, %p850_p12 }
 0x24e   : > { %858 = shalt.err (!%p855_p8)
}
 0x24f   : > { %689 = dma.vmem_to_hbm [thread:$0]  (%p1129_p3), %s1068_s8, 192, %s1066_s11, %s516_s19  }
 0x250 PF: > { %s542_s28 = sand.u32 1, %s889_s15   ;;  %p1130_p11 = scmp.ne.s32.totalorder %s1119_s22, 0 }
 0x251   : > { %p1131_p7 = scmp.ge.s32.totalorder %s901_s18, 2  ;;  %s543_s29 = scalar_lea.sflag [#allocation4], %s542_s28 }
 0x253   : > { %p700_p10 = pnand %p1131_p7, %p1130_p11 }
 0x255   : > { %p701_p2 = pneg %p700_p10 }
 0x257   : > { %884 = dma.done.wait (%p701_p2), %s543_s29, 192  }
 0x258   : > { %886 = vsyncadd (%p701_p2), %s543_s29, 4294967104  ;;  %p18_p13 = scmp.ge.s32.totalorder %s990_s27, 4   ;;  %s1132_s15 = smov %s893_s16 }
 0x259   : > { %s1133_s16 = smov %s897_s17  ;;  %s1134_s17 = smov %s1007_s9 }
 0x25a   : > { %s1135_s18 = smov %s990_s27  ;;  %20 = sbr.rel (!%p18_p13) target bundleno = 6 (0x6), region = 85 }
 0x25f   :  { %548 = vsyncpa [#allocation3], 1 }
 0x260   :  { %550 = vsyncpa [#allocation3 + $0x1], 1 }
 0x261   :  { %551 = vsyncpa [#allocation6], 1 }
 0x262   :  { %552 = vsyncpa [#allocation4], 1 }
 0x263   :  { %554 = vsyncpa [#allocation4 + $0x1], 1 }

</bundles_post_ra>
